<compile_context>
chip_gen: v7x
topology: tpu7x:2x2x1
jax: 0.10.0
libtpu: 0.0.40
codegen_flags: <defaults>
</compile_context>

<pallas_src>
import jax
import jax.numpy as jnp
from jax.experimental import pallas as pl
from jax.experimental.pallas import tpu as pltpu


def _bottleneck2_kernel(w_ref, bias_ref, x_ref, o_ref):
    # w_ref:    (Cout, Cin)   bf16  BN-scale-folded 1x1-conv weight (resident)
    # bias_ref: (Cout, 1)     f32   folded BN bias (includes conv bias)
    # x_ref:    (1, Cin, TS)  bf16  activation tile, spatial on lanes
    # o_ref:    (1, Cout, TS) f32   lane-dense output tile
    acc = jnp.dot(w_ref[...], x_ref[0], preferred_element_type=jnp.float32)
    y = acc + bias_ref[...]                       # f32 epilogue (v5e-safe)
    o_ref[0] = jnp.clip(y, 0.0, 6.0).astype(o_ref.dtype)


def _round_up(x, m):
    return ((x + m - 1) // m) * m


def _vmem_budget_and_limit():
    """Generation-aware VMEM numbers: ~40% of capacity for the tile picker,
    ~70% as the explicit scoped-VMEM limit (v5e/v6e: 128 MiB physical,
    v7x: 64 MiB physical per TensorCore)."""
    cap = None
    try:
        cap = int(pltpu.get_tpu_info().vmem_capacity_bytes)
    except Exception:
        cap = None
    if not cap or cap <= 0:
        cap = 64 << 20  # conservative fallback (v7x per-core VMEM)
    return int(0.40 * cap), int(0.70 * cap)


def _pick_spatial_tile(n, hw, cin, cout, x_bytes, out_bytes, w_bytes,
                       vmem_budget_bytes):
    """Largest multiple-of-128 spatial tile whose pipelined buffers fit the
    VMEM budget.  The grid uses cdiv, so the tile need not divide HW."""
    if hw < 128:
        # Full-extent block (exempt from the 128 rule since it equals HW).
        # TODO(synk): pack several batch elements into the lane axis (or use a
        # Cout-on-lanes layout) so stores stay lane-dense for 7x7/14x14 maps.
        return hw
    hw_padded = _round_up(hw, 128)

    def fits(t):
        need = (2 * cin * t * x_bytes        # double-buffered activation tile
                + 2 * cout * t * out_bytes   # double-buffered output tile
                + 2 * cout * cin * w_bytes   # weight (worst case: 2 buffers)
                + 2 * cout * 4               # bias
                + (1 << 20))                 # compiler-internal scratch headroom
        return need <= vmem_budget_bytes

    tile = 128
    for t in (8192, 4096, 2048, 1024, 512, 256, 128):
        if t <= hw_padded and fits(t):
            tile = t
            break

    # Keep at least 2 parallel grid steps so both v7x TensorCores get work.
    if n * pl.cdiv(hw, tile) < 2 and hw_padded >= 256:
        tile = max(128, _round_up(pl.cdiv(hw, 2), 128))
    return tile


def bottleneck2_forward(x_nchw, w, b_conv, gamma, beta, run_mean, run_var,
                        eps=1e-5):
    """x_nchw: (N, Cin, H, W) float32.  Returns (N, Cout, H, W) float32."""
    N, Cin, H, W = x_nchw.shape
    Cout = w.shape[0]
    HW = H * W

    # NCHW -> (N, Cin, HW): pure reshape, no transpose; bf16 halves HBM reads.
    x = x_nchw.reshape(N, Cin, HW).astype(jnp.bfloat16)

    # Fold eval-mode BatchNorm into the conv weight and a per-channel bias:
    #   y = clip( (scale * W) @ x + (beta + scale * (b_conv - mean)), 0, 6 )
    inv_std = 1.0 / jnp.sqrt(run_var.astype(jnp.float32) + eps)
    scale = gamma.astype(jnp.float32) * inv_std                       # (Cout,)
    w_mat = (w.reshape(Cout, Cin).astype(jnp.float32)
             * scale[:, None]).astype(jnp.bfloat16)                   # (Cout, Cin)
    bias = (beta.astype(jnp.float32)
            + scale * (b_conv.astype(jnp.float32) - run_mean.astype(jnp.float32)))
    bias = bias.reshape(Cout, 1)

    vmem_budget, vmem_limit = _vmem_budget_and_limit()
    tile_s = _pick_spatial_tile(N, HW, Cin, Cout,
                                x_bytes=2, out_bytes=4, w_bytes=2,
                                vmem_budget_bytes=vmem_budget)
    grid = (N, pl.cdiv(HW, tile_s))

    cost = pl.CostEstimate(
        flops=2 * N * Cout * Cin * HW,
        transcendentals=0,
        bytes_accessed=(N * Cin * HW * 2 + N * Cout * HW * 4
                        + Cout * Cin * 2 + Cout * 4),
    )

    def run(single_buffer_consts):
        const_map = lambda b, s: (0, 0)
        if single_buffer_consts:
            # Constant-index blocks don't need double-buffering (saves VMEM,
            # matters most on v7x's 64 MiB VMEM with big channel counts).
            w_spec = pl.BlockSpec((Cout, Cin), const_map,
                                  pipeline_mode=pl.Buffered(1))
            b_spec = pl.BlockSpec((Cout, 1), const_map,
                                  pipeline_mode=pl.Buffered(1))
        else:
            w_spec = pl.BlockSpec((Cout, Cin), const_map)
            b_spec = pl.BlockSpec((Cout, 1), const_map)
        return pl.pallas_call(
            _bottleneck2_kernel,
            out_shape=jax.ShapeDtypeStruct((N, Cout, HW), jnp.float32),
            grid_spec=pltpu.PrefetchScalarGridSpec(
                num_scalar_prefetch=0,
                grid=grid,
                in_specs=[
                    w_spec,
                    b_spec,
                    # One batch element, all channels, one spatial tile.
                    pl.BlockSpec((1, Cin, tile_s), lambda b, s: (b, 0, s)),
                ],
                out_specs=pl.BlockSpec((1, Cout, tile_s),
                                       lambda b, s: (b, 0, s)),
            ),
            compiler_params=pltpu.CompilerParams(
                dimension_semantics=("parallel", "parallel"),
                vmem_limit_bytes=vmem_limit),
            cost_estimate=cost,
        )(w_mat, bias, x)

    try:
        out = run(True)
    except Exception:
        # pl.Buffered(1) rejected by this jax/libtpu combo: fall back to the
        # default double-buffered pipeline (costs one extra weight buffer).
        out = run(False)

    # (N, Cout, HW) -> (N, Cout, H, W): free reshape.
    return out.reshape(N, Cout, H, W)


def reference_forward(x_nchw, w, b_conv, gamma, beta, run_mean, run_var,
                      eps=1e-5):
    # Pure-JAX f32 reference with identical (eval-mode BN) semantics.
    Cout, Cin = w.shape[0], w.shape[1]
    z = jnp.einsum('oi,nihw->nohw', w.reshape(Cout, Cin), x_nchw)
    z = z + b_conv[None, :, None, None]
    z = ((z - run_mean[None, :, None, None])
         / jnp.sqrt(run_var[None, :, None, None] + eps)
         * gamma[None, :, None, None] + beta[None, :, None, None])
    return jnp.clip(z, 0.0, 6.0)


if __name__ == "__main__":
    key = jax.random.PRNGKey(0)
    k_x, k_w, k_b, k_g, k_be, k_m, k_v = jax.random.split(key, 7)

    N, Cin, Cout, H, W = 2, 4, 8, 16, 16

    x = jax.random.normal(k_x, (N, Cin, H, W), dtype=jnp.float32)
    # Conv2d(in_chanel, out_chanel, kernel_size=1) parameters
    w = jax.random.normal(k_w, (Cout, Cin, 1, 1), dtype=jnp.float32) * 0.1
    b_conv = jax.random.normal(k_b, (Cout,), dtype=jnp.float32) * 0.1
    # BatchNorm2d(out_chanel) parameters / running stats (deterministic)
    gamma = 1.0 + 0.1 * jax.random.normal(k_g, (Cout,), dtype=jnp.float32)
    beta = 0.1 * jax.random.normal(k_be, (Cout,), dtype=jnp.float32)
    run_mean = 0.1 * jax.random.normal(k_m, (Cout,), dtype=jnp.float32)
    run_var = jnp.abs(1.0 + 0.1 * jax.random.normal(k_v, (Cout,),
                                                    dtype=jnp.float32))

    out = bottleneck2_forward(x, w, b_conv, gamma, beta, run_mean, run_var)
    out = jax.block_until_ready(out)

    ref = reference_forward(x, w, b_conv, gamma, beta, run_mean, run_var)
    assert out.shape == (N, Cout, H, W)
    # bf16 matmul inputs (f32 accumulation): tolerance relaxed vs. f32 ref.
    err = float(jnp.max(jnp.abs(out - ref)))
    assert jnp.allclose(out, ref, atol=2e-2, rtol=2e-2), err

    print("KERNEL_OK")
</pallas_src>

<mosaic_0001>
module attributes {stable_mosaic.version = 11 : i64} {
  func.func @_bottleneck2_kernel(%arg0: i32, %arg1: i32, %arg2: memref<8x4xbf16, #tpu.memory_space<vmem>>, %arg3: memref<8x1xf32, #tpu.memory_space<vmem>>, %arg4: memref<1x4x256xbf16, #tpu.memory_space<vmem>>, %arg5: memref<1x8x256xf32, #tpu.memory_space<vmem>>) attributes {dimension_semantics = [#tpu.dimension_semantics<parallel>, #tpu.dimension_semantics<parallel>], iteration_bounds = array<i64: 2, 1>, scalar_prefetch = 0 : i64, scratch_operands = 0 : i64, tpu.core_type = #tpu.core_type<tc>, window_params = [{pipeline_mode = #tpu.pipeline_mode<synchronous>, transform_indices = @transform_0, window_bounds = array<i64: 8, 4>}, {pipeline_mode = #tpu.pipeline_mode<synchronous>, transform_indices = @transform_1, window_bounds = array<i64: 8, 1>}, {transform_indices = @transform_2, window_bounds = array<i64: 1, 4, 256>}, {transform_indices = @transform_3, window_bounds = array<i64: 1, 8, 256>}]} {
    %c0 = arith.constant 0 : index
    %c0_0 = arith.constant 0 : index
    %0 = vector.load %arg2[%c0, %c0_0] : memref<8x4xbf16, #tpu.memory_space<vmem>>, vector<8x4xbf16>
    %c0_1 = arith.constant 0 : index
    %c0_2 = arith.constant 0 : index
    %c0_3 = arith.constant 0 : index
    %1 = vector.load %arg4[%c0_1, %c0_2, %c0_3] : memref<1x4x256xbf16, #tpu.memory_space<vmem>>, vector<1x4x256xbf16>
    %2 = vector.shape_cast %1 : vector<1x4x256xbf16> to vector<4x256xbf16>
    %cst = arith.constant dense<0.000000e+00> : vector<8x256xf32>
    %3 = tpu.matmul %0, %2, %cst {dimension_numbers = #tpu.dot_dimension_numbers<[1], [0], [0], [1], [0, 0, 1, 1], [], []>} : vector<8x4xbf16>, vector<4x256xbf16>, vector<8x256xf32> -> vector<8x256xf32>
    %c0_4 = arith.constant 0 : index
    %c0_5 = arith.constant 0 : index
    %4 = vector.load %arg3[%c0_4, %c0_5] : memref<8x1xf32, #tpu.memory_space<vmem>>, vector<8x1xf32>
    %5 = vector.broadcast %4 : vector<8x1xf32> to vector<8x256xf32>
    %6 = arith.addf %3, %5 : vector<8x256xf32>
    %cst_6 = arith.constant 0.000000e+00 : f32
    %cst_7 = arith.constant 6.000000e+00 : f32
    %7 = vector.broadcast %cst_6 : f32 to vector<8x256xf32>
    %8 = arith.maximumf %7, %6 : vector<8x256xf32>
    %9 = vector.broadcast %cst_7 : f32 to vector<8x256xf32>
    %10 = arith.minimumf %9, %8 : vector<8x256xf32>
    %c0_8 = arith.constant 0 : index
    %c0_9 = arith.constant 0 : index
    %c0_10 = arith.constant 0 : index
    %11 = vector.load %arg5[%c0_8, %c0_9, %c0_10] : memref<1x8x256xf32, #tpu.memory_space<vmem>>, vector<1x8x256xf32>
    %12 = vector.shape_cast %11 : vector<1x8x256xf32> to vector<8x256xf32>
    %13 = vector.shape_cast %10 : vector<8x256xf32> to vector<1x8x256xf32>
    tpu.vector_store %arg5[%c0_8, %c0_9, %c0_10], %13 {strides = array<i32>} : memref<1x8x256xf32, #tpu.memory_space<vmem>>, vector<1x8x256xf32>,
    return
  }
  func.func @transform_0(%arg0: i32, %arg1: i32) -> (i32, i32) {
    %c0_i32 = arith.constant 0 : i32
    %c0_i32_0 = arith.constant 0 : i32
    %c0_i32_1 = arith.constant 0 : i32
    return %c0_i32, %c0_i32_0 : i32, i32
  }
  func.func @transform_1(%arg0: i32, %arg1: i32) -> (i32, i32) {
    %c0_i32 = arith.constant 0 : i32
    %c0_i32_0 = arith.constant 0 : i32
    %c0_i32_1 = arith.constant 0 : i32
    return %c0_i32, %c0_i32_0 : i32, i32
  }
  func.func @transform_2(%arg0: i32, %arg1: i32) -> (i32, i32, i32) {
    %c0_i32 = arith.constant 0 : i32
    %c0_i32_0 = arith.constant 0 : i32
    return %arg0, %c0_i32, %arg1 : i32, i32, i32
  }
  func.func @transform_3(%arg0: i32, %arg1: i32) -> (i32, i32, i32) {
    %c0_i32 = arith.constant 0 : i32
    %c0_i32_0 = arith.constant 0 : i32
    return %arg0, %c0_i32, %arg1 : i32, i32, i32
  }
}

module attributes {stable_mosaic.version = 11 : i64} {
  func.func @_bottleneck2_kernel(%arg0: i32, %arg1: i32, %arg2: memref<8x4xbf16, #tpu.memory_space<vmem>>, %arg3: memref<8x1xf32, #tpu.memory_space<vmem>>, %arg4: memref<1x4x256xbf16, #tpu.memory_space<vmem>>, %arg5: memref<1x8x256xf32, #tpu.memory_space<vmem>>) attributes {dimension_semantics = [#tpu.dimension_semantics<parallel>, #tpu.dimension_semantics<parallel>], iteration_bounds = array<i64: 2, 1>, scalar_prefetch = 0 : i64, scratch_operands = 0 : i64, tpu.core_type = #tpu.core_type<tc>, window_params = [{pipeline_mode = #tpu.pipeline_mode<synchronous>, transform_indices = @transform_0, window_bounds = array<i64: 8, 4>}, {pipeline_mode = #tpu.pipeline_mode<synchronous>, transform_indices = @transform_1, window_bounds = array<i64: 8, 1>}, {transform_indices = @transform_2, window_bounds = array<i64: 1, 4, 256>}, {transform_indices = @transform_3, window_bounds = array<i64: 1, 8, 256>}]} {
    %c0 = arith.constant 0 : index
    %c0_0 = arith.constant 0 : index
    %0 = vector.load %arg2[%c0, %c0_0] : memref<8x4xbf16, #tpu.memory_space<vmem>>, vector<8x4xbf16>
    %c0_1 = arith.constant 0 : index
    %c0_2 = arith.constant 0 : index
    %c0_3 = arith.constant 0 : index
    %1 = vector.load %arg4[%c0_1, %c0_2, %c0_3] : memref<1x4x256xbf16, #tpu.memory_space<vmem>>, vector<1x4x256xbf16>
    %2 = vector.shape_cast %1 : vector<1x4x256xbf16> to vector<4x256xbf16>
    %cst = arith.constant dense<0.000000e+00> : vector<8x256xf32>
    %3 = tpu.matmul %0, %2, %cst {dimension_numbers = #tpu.dot_dimension_numbers<[1], [0], [0], [1], [0, 0, 1, 1], [], []>} : vector<8x4xbf16>, vector<4x256xbf16>, vector<8x256xf32> -> vector<8x256xf32>
    %c0_4 = arith.constant 0 : index
    %c0_5 = arith.constant 0 : index
    %4 = vector.load %arg3[%c0_4, %c0_5] : memref<8x1xf32, #tpu.memory_space<vmem>>, vector<8x1xf32>
    %5 = vector.broadcast %4 : vector<8x1xf32> to vector<8x256xf32>
    %6 = arith.addf %3, %5 : vector<8x256xf32>
    %cst_6 = arith.constant 0.000000e+00 : f32
    %cst_7 = arith.constant 6.000000e+00 : f32
    %7 = vector.broadcast %cst_6 : f32 to vector<8x256xf32>
    %8 = arith.maximumf %7, %6 : vector<8x256xf32>
    %9 = vector.broadcast %cst_7 : f32 to vector<8x256xf32>
    %10 = arith.minimumf %9, %8 : vector<8x256xf32>
    %c0_8 = arith.constant 0 : index
    %c0_9 = arith.constant 0 : index
    %c0_10 = arith.constant 0 : index
    %11 = vector.load %arg5[%c0_8, %c0_9, %c0_10] : memref<1x8x256xf32, #tpu.memory_space<vmem>>, vector<1x8x256xf32>
    %12 = vector.shape_cast %11 : vector<1x8x256xf32> to vector<8x256xf32>
    %13 = vector.shape_cast %10 : vector<8x256xf32> to vector<1x8x256xf32>
    tpu.vector_store %arg5[%c0_8, %c0_9, %c0_10], %13 {strides = array<i32>} : memref<1x8x256xf32, #tpu.memory_space<vmem>>, vector<1x8x256xf32>,
    return
  }
  func.func @transform_0(%arg0: i32, %arg1: i32) -> (i32, i32) {
    %c0_i32 = arith.constant 0 : i32
    %c0_i32_0 = arith.constant 0 : i32
    %c0_i32_1 = arith.constant 0 : i32
    return %c0_i32, %c0_i32_0 : i32, i32
  }
  func.func @transform_1(%arg0: i32, %arg1: i32) -> (i32, i32) {
    %c0_i32 = arith.constant 0 : i32
    %c0_i32_0 = arith.constant 0 : i32
    %c0_i32_1 = arith.constant 0 : i32
    return %c0_i32, %c0_i32_0 : i32, i32
  }
  func.func @transform_2(%arg0: i32, %arg1: i32) -> (i32, i32, i32) {
    %c0_i32 = arith.constant 0 : i32
    %c0_i32_0 = arith.constant 0 : i32
    return %arg0, %c0_i32, %arg1 : i32, i32, i32
  }
  func.func @transform_3(%arg0: i32, %arg1: i32) -> (i32, i32, i32) {
    %c0_i32 = arith.constant 0 : i32
    %c0_i32_0 = arith.constant 0 : i32
    return %arg0, %c0_i32, %arg1 : i32, i32, i32
  }
}

</mosaic_0001>

<bundles_post_ra>
// kernel: tpu_custom_call.1
= control target key start
LH: loop header
LB: loop body
LE: loop exit
PB: predicated region body
PF: predicated region fallthrough
CT: control target
= control target key end

     0   :  { %8 = vsyncpa [#allocation3], 0  ;;  %s664_s0 = inlined_call_operand.vmem [shape: bf16[8,4], index: 0, kind: input, shape index: {}]   ;;  %s665_s1 = inlined_call_operand.vmem [shape: f32[8,1], index: 1, kind: input, shape index: {}]   ;;  %s666_s2 = inlined_call_operand.vmem [shape: bf16[2,4,256], index: 2, kind: input, shape index: {}]   ;;  %s667_s3 = inlined_call_operand.hbm [shape: f32[2,8,256], index: 3, kind: output, shape index: {}]  }
   0x1   :  { %10 = vsyncpa [#allocation3 + $0x1], 0  ;;  %s546_s12 = smov 0   ;;  %s548_s13 = smov 0  }
   0x2   :  { %s550_s14 = smov 0   ;;  %s552_s15 = smov 0  }
   0x3   :  { %s554_s16 = smov 0   ;;  %s556_s17 = smov 0  }
   0x4 LB: > { %s369_s18 = sadd.s32 4294967295, %s522_s17   ;;  %s370_s19 = sadd.s32 4294967294, %s522_s17   ;;  %s522_s17 = sphi %s556_s17, %s16_s17   ;;  %s518_s16 = sphi %s554_s16, %s674_s16   ;;  %s514_s15 = sphi %s552_s15, %s673_s15   ;;  %s510_s14 = sphi %s550_s14, %s672_s14   ;;  %s506_s13 = sphi %s548_s13, %s671_s13   ;;  %s502_s12 = sphi %s546_s12, %s670_s12  }
   0x5   : > { %s28_s20 = sadd.s32 1, %s518_s16  ;;  %s107_s21 = sadd.s32 1, %s510_s14 }
   0x6   : > { %p30_p0 = scmp.ge.s32.totalorder %s28_s20, 2  ;;  %p117_p1 = scmp.ne.s32.totalorder %s510_s14, %s506_s13 }
   0x7   : > { %p118_p2 = scmp.eq.s32.totalorder %s369_s18, 1  ;;  %p123_p3 = scmp.ne.s32.totalorder %s506_s13, %s502_s12 }
   0x8   : > { %s676_s20 = smov (%p30_p0, %s28_s20), 0  ;;  %p124_p5 = scmp.eq.s32.totalorder %s370_s19, 1 }
   0x9   : > { %p586_p4 = por %p118_p2, %p117_p1  ;;  %s102_s23 = ssub.s32 %s518_s16, %s676_s20 }
   0xa   : > { %p373_p6 = scmp.ge.s32.totalorder %s522_s17, 1  ;;  %p105_p7 = scmp.eq.s32.totalorder %s102_s23, 0 }
   0xb   : > { %p593_p8 = por %p124_p5, %p123_p3  ;;  %p161_p9 = scmp.lt.s32.totalorder %s522_s17, 3 }
   0xc   : > { %s599_s25 = scalar_select %p105_p7, %s510_s14, %s107_s21  }
   0xd   : > { %p162_p10 = pnand %p373_p6, %p161_p9 }
   0xe   : > { %p190_p11 = scmp.lt.s32.totalorder (!%p162_p10), %s514_s15, 1  ;;  %v524_v0 = vmov (!%p162_p10), 0   ;;  %v203_v1 = vld [vmem:[%s665_s1] sm:$0xff] (!%p162_p10)  ;;  %vm222_vm0 = vcmask (!%p162_p10), 1041408   ;;  %vm218_vm1 = vcmask (!%p162_p10), 31744   ;;  %s186_s8 = sand.u32 (!%p162_p10), 1, %s506_s13  }
   0xf   : > { %165 = sbr.rel (%p162_p10) target bundleno = 266 (0x10a), region = 32  ;;  %261 = vmatprep.mubr.bf16.mxu0 (!%p162_p10), %v524_v0  ;;  %443 = vset.pattern.permute.xlu0 (!%p162_p10), %v524_v0  ;;  %v201_v5 = vld [vmem:[%s664_s0] sm:$0xf] (!%p162_p10)  ;;  %s374_s9 = sshll.u32 (!%p162_p10), %s186_s8, 4 }
  0x10   : > { %206 = vperm.xlu0 (!%p162_p10), %443, %v203_v1   ;;  %s386_s10 = sshll.u32 (!%p162_p10), %s514_s15, 8  ;;  %s188_s11 = scalar_lea.vmem (!%p162_p10), [#allocation2], %s374_s9 }
  0x11   : > { %s293_s18 = sshll.u32 (!%p162_p10), %s188_s11, 4  ;;  %s617_s23 = scalar_lea.hbm (!%p162_p10), %s667_s3, %s386_s10  ;;  %s619_s18 = int_to_ptr.vmem [resolvable:$true] %s293_s18 }
  0x12   : > { %s277_s26 = scalar_lea.sflag (!%p162_p10), [#allocation3], %s186_s8  ;;  %s444_s27 = scalar_lea.vmem (!%p162_p10), %s619_s18, 256 }
  0x13   : > { %p445_p12 = scmp.ne.s32.totalorder (!%p162_p10), %s619_s18, %s444_s27 }
  0x15   : > { %p446_p13 = pnand (!%p162_p10), %p445_p12, %p586_p4 }
  0x16   : > { %s191_s28 = scalar_select %p190_p11, %s514_s15, 1 }
  0x17   : > { %p447_p0 = pneg %p446_p13  ;;  %s525_s15 = smov [#allocation2]  }
  0x18   : > { %s385_s29 = sshll.u32 %s191_s28, 2  ;;  %s448_s28 = sshll.u32 %s525_s15, 4  ;;  %s449_s28 = int_to_ptr.vmem [resolvable:$false] %s448_s28 }
  0x19   : > { %s197_s5 = scalar_lea.vmem %s666_s2, %s385_s29  ;;  %s450_s29 = scalar_lea.vmem %s449_s28, 512 }
  0x1a   : > { %v377_v2 = vld.sshfl [vmem:[%s197_s5] sm:$0x33 pattern:$0x76325410]  ;;  %p451_p1 = scmp.lt.s32.totalorder %s619_s18, %s449_s28  ;;  %p452_p2 = scmp.lt.s32.totalorder %s450_s29, %s444_s27 }
  0x1b   : > { %v217_v3 = vcombine.high %v377_v2, %v377_v2  ;;  %v224_v4 = vsel %vm222_vm0, %v377_v2, 0 }
  0x1c   : > { %p453_p3 = por %p452_p2, %p451_p1 }
  0x1d   : > { %378 = vmatprep.subr.msk.bf16.mxu0 %vm222_vm0, %v217_v3 }
  0x1e   : > { %230 = vmatpush1.bf16.msra.mxu0 %v224_v4  ;;  %p454_p5 = pnand %p453_p3, %p447_p0 }
  0x21   : > { %379 = vmatmul.mubr.msk.bf16.vlgmr.msra.gmra.mrb[0].mxu0 %vm218_vm1, %v201_v5 }
  0x8f   : > { %v207_v6 = vpop.permute.xlu0 %206 }
  0xf4   : > { %v263_v7 = vpop.f32.mrb[0].mxu0 }
  0xf5   : > { %v264_v8 = vadd.f32 %v263_v7, %v207_v6  ;;  %v265_v9 = vpop.f32.mrb[1].mxu0 }
  0xf6   : > { %v266_v10 = vadd.f32 %v265_v9, %v207_v6  ;;  %v267_v11 = vpop.f32.mrb[2].mxu0 }
  0xf7   : > { %v270_v12 = vmax.f32 %v264_v8, 0.0  ;;  %v268_v13 = vpop.f32.mrb[3].mxu0 }
  0xf8   : > { %v271_v14 = vmax.f32 %v266_v10, 0.0 }
  0xf9   : > { %v272_v15 = vmin.f32 %v270_v12, 6.0 }
  0xfa   : > { %v273_v16 = vmin.f32 %v271_v14, 6.0 }
  0xfb   : > { %274 = vst [vmem:[%s188_s11] sm:$0xff] %v272_v15 }
  0xfc   : > { %275 = vst [vmem:[%s188_s11 + $0x8] sm:$0xff] %v273_v16 }
  0xfd   : > { %457 = shalt.err (!%p454_p5)
}
  0xfe   : > { %s458_s30 = scalar_lea.hbm %s617_s23, 256  ;;  %s462_s6 = scalar_lea.hbm %s667_s3, 512 }
  0xff   : > { %p459_p6 = scmp.ne.s32.totalorder %s617_s23, %s458_s30  ;;  %p463_p10 = scmp.lt.u32.totalorder %s617_s23, %s667_s3 }
 0x100   : > { %p464_p11 = scmp.lt.u32.totalorder %s462_s6, %s458_s30  ;;  %p466_p13 = scmp.lt.u32.totalorder %s458_s30, %s617_s23 }
 0x101   : > { %p460_p7 = pnand %p459_p6, %p586_p4 }
 0x102   : > { %p465_p12 = por %p464_p11, %p463_p10 }
 0x103   : > { %p461_p9 = pneg %p460_p7 }
 0x104   : > { %p467_p0 = por %p466_p13, %p465_p12 }
 0x106   : > { %p468_p1 = pnand %p467_p0, %p461_p9 }
 0x108   : > { %471 = shalt.err (!%p468_p1)
}
 0x109   : > { %387 = dma.vmem_to_hbm [thread:$0]  (%p586_p4), %s619_s18, 256, %s617_s23, %s277_s26  }
 0x10a PF: > { %p393_p2 = scmp.ge.s32.totalorder %s522_s17, 2  ;;  %s305_s9 = sand.u32 1, %s502_s12  }
 0x10b   : > { %s306_s10 = scalar_lea.sflag [#allocation3], %s305_s9 }
 0x10c   : > { %p390_p3 = pnand %p393_p2, %p593_p8 }
 0x10e   : > { %497 = dma.done.wait (!%p390_p3), %s306_s10, 256  }
 0x10f   : > { %499 = vsyncadd (!%p390_p3), %s306_s10, 4294967040  ;;  %s16_s17 = sadd.s32 1, %s522_s17   ;;  %s670_s12 = smov %s506_s13 }
 0x110   : > { %p13_p5 = scmp.ge.s32.totalorder %s16_s17, 4   ;;  %s671_s13 = smov %s510_s14 }
 0x111   : > { %s672_s14 = smov %s599_s25  ;;  %s673_s15 = smov %s518_s16 }
 0x112   : > { %s674_s16 = smov %s676_s20  ;;  %15 = sbr.rel (!%p13_p5) target bundleno = 4 (0x4), region = 67 }
 0x119   :  { %311 = vsyncpa [#allocation3], 1 }
 0x11a   :  { %313 = vsyncpa [#allocation3 + $0x1], 1 }

// kernel: tpu_custom_call.1
= control target key start
LH: loop header
LB: loop body
LE: loop exit
PB: predicated region body
PF: predicated region fallthrough
CT: control target
= control target key end

     0   :  { %8 = vsyncpa [#allocation3], 0  ;;  %s664_s0 = inlined_call_operand.vmem [shape: bf16[8,4], index: 0, kind: input, shape index: {}]   ;;  %s665_s1 = inlined_call_operand.vmem [shape: f32[8,1], index: 1, kind: input, shape index: {}]   ;;  %s666_s2 = inlined_call_operand.vmem [shape: bf16[2,4,256], index: 2, kind: input, shape index: {}]   ;;  %s667_s3 = inlined_call_operand.hbm [shape: f32[2,8,256], index: 3, kind: output, shape index: {}]  }
   0x1   :  { %10 = vsyncpa [#allocation3 + $0x1], 0  ;;  %s546_s12 = smov 0   ;;  %s548_s13 = smov 0  }
   0x2   :  { %s550_s14 = smov 0   ;;  %s552_s15 = smov 0  }
   0x3   :  { %s554_s16 = smov 0   ;;  %s556_s17 = smov 0  }
   0x4 LB: > { %s369_s18 = sadd.s32 4294967295, %s522_s17   ;;  %s370_s19 = sadd.s32 4294967294, %s522_s17   ;;  %s522_s17 = sphi %s556_s17, %s16_s17   ;;  %s518_s16 = sphi %s554_s16, %s674_s16   ;;  %s514_s15 = sphi %s552_s15, %s673_s15   ;;  %s510_s14 = sphi %s550_s14, %s672_s14   ;;  %s506_s13 = sphi %s548_s13, %s671_s13   ;;  %s502_s12 = sphi %s546_s12, %s670_s12  }
   0x5   : > { %s28_s20 = sadd.s32 1, %s518_s16  ;;  %s107_s21 = sadd.s32 1, %s510_s14 }
   0x6   : > { %p30_p0 = scmp.ge.s32.totalorder %s28_s20, 2  ;;  %p117_p1 = scmp.ne.s32.totalorder %s510_s14, %s506_s13 }
   0x7   : > { %p118_p2 = scmp.eq.s32.totalorder %s369_s18, 1  ;;  %p123_p3 = scmp.ne.s32.totalorder %s506_s13, %s502_s12 }
   0x8   : > { %s676_s20 = smov (%p30_p0, %s28_s20), 0  ;;  %p124_p5 = scmp.eq.s32.totalorder %s370_s19, 1 }
   0x9   : > { %p586_p4 = por %p118_p2, %p117_p1  ;;  %s102_s23 = ssub.s32 %s518_s16, %s676_s20 }
   0xa   : > { %p373_p6 = scmp.ge.s32.totalorder %s522_s17, 1  ;;  %p105_p7 = scmp.eq.s32.totalorder %s102_s23, 0 }
   0xb   : > { %p593_p8 = por %p124_p5, %p123_p3  ;;  %p161_p9 = scmp.lt.s32.totalorder %s522_s17, 3 }
   0xc   : > { %s599_s25 = scalar_select %p105_p7, %s510_s14, %s107_s21  }
   0xd   : > { %p162_p10 = pnand %p373_p6, %p161_p9 }
   0xe   : > { %p190_p11 = scmp.lt.s32.totalorder (!%p162_p10), %s514_s15, 1  ;;  %v524_v0 = vmov (!%p162_p10), 0   ;;  %v203_v1 = vld [vmem:[%s665_s1] sm:$0xff] (!%p162_p10)  ;;  %vm222_vm0 = vcmask (!%p162_p10), 1041408   ;;  %vm218_vm1 = vcmask (!%p162_p10), 31744   ;;  %s186_s8 = sand.u32 (!%p162_p10), 1, %s506_s13  }
   0xf   : > { %165 = sbr.rel (%p162_p10) target bundleno = 266 (0x10a), region = 32  ;;  %261 = vmatprep.mubr.bf16.mxu0 (!%p162_p10), %v524_v0  ;;  %443 = vset.pattern.permute.xlu0 (!%p162_p10), %v524_v0  ;;  %v201_v5 = vld [vmem:[%s664_s0] sm:$0xf] (!%p162_p10)  ;;  %s374_s9 = sshll.u32 (!%p162_p10), %s186_s8, 4 }
  0x10   : > { %206 = vperm.xlu0 (!%p162_p10), %443, %v203_v1   ;;  %s386_s10 = sshll.u32 (!%p162_p10), %s514_s15, 8  ;;  %s188_s11 = scalar_lea.vmem (!%p162_p10), [#allocation2], %s374_s9 }
  0x11   : > { %s293_s18 = sshll.u32 (!%p162_p10), %s188_s11, 4  ;;  %s617_s23 = scalar_lea.hbm (!%p162_p10), %s667_s3, %s386_s10  ;;  %s619_s18 = int_to_ptr.vmem [resolvable:$true] %s293_s18 }
  0x12   : > { %s277_s26 = scalar_lea.sflag (!%p162_p10), [#allocation3], %s186_s8  ;;  %s444_s27 = scalar_lea.vmem (!%p162_p10), %s619_s18, 256 }
  0x13   : > { %p445_p12 = scmp.ne.s32.totalorder (!%p162_p10), %s619_s18, %s444_s27 }
  0x15   : > { %p446_p13 = pnand (!%p162_p10), %p445_p12, %p586_p4 }
  0x16   : > { %s191_s28 = scalar_select %p190_p11, %s514_s15, 1 }
  0x17   : > { %p447_p0 = pneg %p446_p13  ;;  %s525_s15 = smov [#allocation2]  }
  0x18   : > { %s385_s29 = sshll.u32 %s191_s28, 2  ;;  %s448_s28 = sshll.u32 %s525_s15, 4  ;;  %s449_s28 = int_to_ptr.vmem [resolvable:$false] %s448_s28 }
  0x19   : > { %s197_s5 = scalar_lea.vmem %s666_s2, %s385_s29  ;;  %s450_s29 = scalar_lea.vmem %s449_s28, 512 }
  0x1a   : > { %v377_v2 = vld.sshfl [vmem:[%s197_s5] sm:$0x33 pattern:$0x76325410]  ;;  %p451_p1 = scmp.lt.s32.totalorder %s619_s18, %s449_s28  ;;  %p452_p2 = scmp.lt.s32.totalorder %s450_s29, %s444_s27 }
  0x1b   : > { %v217_v3 = vcombine.high %v377_v2, %v377_v2  ;;  %v224_v4 = vsel %vm222_vm0, %v377_v2, 0 }
  0x1c   : > { %p453_p3 = por %p452_p2, %p451_p1 }
  0x1d   : > { %378 = vmatprep.subr.msk.bf16.mxu0 %vm222_vm0, %v217_v3 }
  0x1e   : > { %230 = vmatpush1.bf16.msra.mxu0 %v224_v4  ;;  %p454_p5 = pnand %p453_p3, %p447_p0 }
  0x21   : > { %379 = vmatmul.mubr.msk.bf16.vlgmr.msra.gmra.mrb[0].mxu0 %vm218_vm1, %v201_v5 }
  0x8f   : > { %v207_v6 = vpop.permute.xlu0 %206 }
  0xf4   : > { %v263_v7 = vpop.f32.mrb[0].mxu0 }
  0xf5   : > { %v264_v8 = vadd.f32 %v263_v7, %v207_v6  ;;  %v265_v9 = vpop.f32.mrb[1].mxu0 }
  0xf6   : > { %v266_v10 = vadd.f32 %v265_v9, %v207_v6  ;;  %v267_v11 = vpop.f32.mrb[2].mxu0 }
  0xf7   : > { %v270_v12 = vmax.f32 %v264_v8, 0.0  ;;  %v268_v13 = vpop.f32.mrb[3].mxu0 }
  0xf8   : > { %v271_v14 = vmax.f32 %v266_v10, 0.0 }
  0xf9   : > { %v272_v15 = vmin.f32 %v270_v12, 6.0 }
  0xfa   : > { %v273_v16 = vmin.f32 %v271_v14, 6.0 }
  0xfb   : > { %274 = vst [vmem:[%s188_s11] sm:$0xff] %v272_v15 }
  0xfc   : > { %275 = vst [vmem:[%s188_s11 + $0x8] sm:$0xff] %v273_v16 }
  0xfd   : > { %457 = shalt.err (!%p454_p5)
}
  0xfe   : > { %s458_s30 = scalar_lea.hbm %s617_s23, 256  ;;  %s462_s6 = scalar_lea.hbm %s667_s3, 512 }
  0xff   : > { %p459_p6 = scmp.ne.s32.totalorder %s617_s23, %s458_s30  ;;  %p463_p10 = scmp.lt.u32.totalorder %s617_s23, %s667_s3 }
 0x100   : > { %p464_p11 = scmp.lt.u32.totalorder %s462_s6, %s458_s30  ;;  %p466_p13 = scmp.lt.u32.totalorder %s458_s30, %s617_s23 }
 0x101   : > { %p460_p7 = pnand %p459_p6, %p586_p4 }
 0x102   : > { %p465_p12 = por %p464_p11, %p463_p10 }
 0x103   : > { %p461_p9 = pneg %p460_p7 }
 0x104   : > { %p467_p0 = por %p466_p13, %p465_p12 }
 0x106   : > { %p468_p1 = pnand %p467_p0, %p461_p9 }
 0x108   : > { %471 = shalt.err (!%p468_p1)
}
 0x109   : > { %387 = dma.vmem_to_hbm [thread:$0]  (%p586_p4), %s619_s18, 256, %s617_s23, %s277_s26  }
 0x10a PF: > { %p393_p2 = scmp.ge.s32.totalorder %s522_s17, 2  ;;  %s305_s9 = sand.u32 1, %s502_s12  }
 0x10b   : > { %s306_s10 = scalar_lea.sflag [#allocation3], %s305_s9 }
 0x10c   : > { %p390_p3 = pnand %p393_p2, %p593_p8 }
 0x10e   : > { %497 = dma.done.wait (!%p390_p3), %s306_s10, 256  }
 0x10f   : > { %499 = vsyncadd (!%p390_p3), %s306_s10, 4294967040  ;;  %s16_s17 = sadd.s32 1, %s522_s17   ;;  %s670_s12 = smov %s506_s13 }
 0x110   : > { %p13_p5 = scmp.ge.s32.totalorder %s16_s17, 4   ;;  %s671_s13 = smov %s510_s14 }
 0x111   : > { %s672_s14 = smov %s599_s25  ;;  %s673_s15 = smov %s518_s16 }
 0x112   : > { %s674_s16 = smov %s676_s20  ;;  %15 = sbr.rel (!%p13_p5) target bundleno = 4 (0x4), region = 67 }
 0x119   :  { %311 = vsyncpa [#allocation3], 1 }
 0x11a   :  { %313 = vsyncpa [#allocation3 + $0x1], 1 }

</bundles_post_ra>
